<compile_context>
chip_gen: v7x
topology: tpu7x:2x2x1
jax: 0.10.0
libtpu: 0.0.40
codegen_flags: <defaults>
</compile_context>

<pallas_src>
import functools

import jax
import jax.numpy as jnp
from jax.experimental import pallas as pl
from jax.experimental.pallas import tpu as pltpu


# ----------------------------------------------------------------------------
# Fused Pallas kernel
# ----------------------------------------------------------------------------
def _mlp_kernel(*refs, num_layers):
    """Fused MLP: x -> [Linear + ReLU] * (L-1) -> Linear.

    refs layout: (x_ref, w_0..w_{L-1}, b_0..b_{L-1}, o_ref)
      x_ref : (M, D_in)        tokens flattened over all leading dims
      w_i   : (D_i, D_{i+1})   already transposed from PyTorch's (out, in)
      b_i   : (1, D_{i+1})
      o_ref : (M, D_out)
    """
    x_ref = refs[0]
    w_refs = refs[1:1 + num_layers]
    b_refs = refs[1 + num_layers:1 + 2 * num_layers]
    o_ref = refs[1 + 2 * num_layers]

    h = x_ref[...].astype(jnp.float32)
    for i in range(num_layers):                      # static unroll over layers
        h = jnp.dot(h, w_refs[i][...].astype(jnp.float32),
                    preferred_element_type=jnp.float32)
        h = h + b_refs[i][...].astype(jnp.float32)
        if i < num_layers - 1:
            h = jnp.maximum(h, 0.0)                  # F.relu on all but last layer
    o_ref[...] = h.astype(o_ref.dtype)


# ----------------------------------------------------------------------------
# Wrapper
# ----------------------------------------------------------------------------
def mlp_forward(x, params):
    """x: (..., input_dim); params: list of (w, b) with w: (d_in, d_out), b: (d_out,)."""
    num_layers = len(params)
    out_dim = params[-1][0].shape[1]
    lead = x.shape[:-1]
    m = 1
    for d in lead:
        m *= d
    x2 = x.reshape(m, x.shape[-1])                   # fold batch into matmul M

    ws = [w for (w, _) in params]
    bs = [b.reshape(1, -1) for (_, b) in params]

    n_in = 1 + 2 * num_layers
    vmem_spec = pl.BlockSpec(memory_space=pltpu.MemorySpace.VMEM)  # whole array in VMEM

    kernel = functools.partial(_mlp_kernel, num_layers=num_layers)
    out = pl.pallas_call(
        kernel,
        out_shape=jax.ShapeDtypeStruct((m, out_dim), x.dtype),
        in_specs=[vmem_spec] * n_in,
        out_specs=vmem_spec,
    )(x2, *ws, *bs)
    return out.reshape(*lead, out_dim)


# ----------------------------------------------------------------------------
# Parameter construction (stand-in for c2_xavier_fill; weights kept as W^T)
# ----------------------------------------------------------------------------
def init_params(key, input_dim, hidden_dim, output_dim, num_layers):
    h = [hidden_dim] * (num_layers - 1)
    dims = list(zip([input_dim] + h, h + [output_dim]))   # (n, k) per layer
    params = []
    keys = jax.random.split(key, 2 * num_layers)
    for i, (d_in, d_out) in enumerate(dims):
        bound = (3.0 / d_in) ** 0.5                        # kaiming_uniform(a=1)
        w = jax.random.uniform(keys[2 * i], (d_in, d_out), jnp.float32,
                               -bound, bound)
        # c2_xavier_fill zeros the bias; use small random biases here so the
        # bias-add path is actually exercised in the correctness check.
        b = 0.1 * jax.random.normal(keys[2 * i + 1], (d_out,), jnp.float32)
        params.append((w, b))
    return params


# ----------------------------------------------------------------------------
# Pure-JAX reference (matches torch: relu(layer(x)) for i < L-1, layer(x) last)
# ----------------------------------------------------------------------------
def ref_forward(x, params):
    num_layers = len(params)
    h = x
    for i, (w, b) in enumerate(params):
        h = jnp.dot(h, w, preferred_element_type=jnp.float32) + b
        if i < num_layers - 1:
            h = jnp.maximum(h, 0.0)
    return h.astype(x.dtype)


# ----------------------------------------------------------------------------
if __name__ == "__main__":
    INPUT_DIM, HIDDEN_DIM, OUTPUT_DIM, NUM_LAYERS = 32, 128, 32, 3
    B, S = 2, 8

    key = jax.random.PRNGKey(0)
    kx, kp = jax.random.split(key)
    params = init_params(kp, INPUT_DIM, HIDDEN_DIM, OUTPUT_DIM, NUM_LAYERS)
    x = jax.random.normal(kx, (B, S, INPUT_DIM), jnp.float32)

    out = jax.block_until_ready(mlp_forward(x, params))
    assert out.shape == (B, S, OUTPUT_DIM), out.shape

    ref = ref_forward(x, params)
    if not jnp.allclose(out, ref, rtol=2e-3, atol=2e-3):
        raise AssertionError("Pallas MLP output mismatch vs JAX reference")

    print("KERNEL_OK")
</pallas_src>

<mosaic_0001>
module attributes {stable_mosaic.version = 11 : i64} {
  func.func @_mlp_kernel(%arg0: memref<16x32xf32, #tpu.memory_space<vmem>>, %arg1: memref<32x128xf32, #tpu.memory_space<vmem>>, %arg2: memref<128x128xf32, #tpu.memory_space<vmem>>, %arg3: memref<128x32xf32, #tpu.memory_space<vmem>>, %arg4: memref<1x128xf32, #tpu.memory_space<vmem>>, %arg5: memref<1x128xf32, #tpu.memory_space<vmem>>, %arg6: memref<1x32xf32, #tpu.memory_space<vmem>>, %arg7: memref<16x32xf32, #tpu.memory_space<vmem>>) attributes {dimension_semantics = [], scalar_prefetch = 0 : i64, scratch_operands = 0 : i64, tpu.core_type = #tpu.core_type<tc>} {
    %c0 = arith.constant 0 : index
    %c0_0 = arith.constant 0 : index
    %0 = vector.load %arg0[%c0, %c0_0] : memref<16x32xf32, #tpu.memory_space<vmem>>, vector<16x32xf32>
    %c0_1 = arith.constant 0 : index
    %c0_2 = arith.constant 0 : index
    %1 = vector.load %arg1[%c0_1, %c0_2] : memref<32x128xf32, #tpu.memory_space<vmem>>, vector<32x128xf32>
    %cst = arith.constant dense<0.000000e+00> : vector<16x128xf32>
    %2 = tpu.matmul %0, %1, %cst {dimension_numbers = #tpu.dot_dimension_numbers<[1], [0], [0], [1], [0, 0, 1, 1], [], []>} : vector<16x32xf32>, vector<32x128xf32>, vector<16x128xf32> -> vector<16x128xf32>
    %c0_3 = arith.constant 0 : index
    %c0_4 = arith.constant 0 : index
    %3 = vector.load %arg4[%c0_3, %c0_4] : memref<1x128xf32, #tpu.memory_space<vmem>>, vector<1x128xf32>
    %4 = vector.broadcast %3 : vector<1x128xf32> to vector<16x128xf32>
    %5 = arith.addf %2, %4 : vector<16x128xf32>
    %cst_5 = arith.constant 0.000000e+00 : f32
    %6 = vector.broadcast %cst_5 : f32 to vector<16x128xf32>
    %7 = arith.maximumf %5, %6 : vector<16x128xf32>
    %c0_6 = arith.constant 0 : index
    %c0_7 = arith.constant 0 : index
    %8 = vector.load %arg2[%c0_6, %c0_7] : memref<128x128xf32, #tpu.memory_space<vmem>>, vector<128x128xf32>
    %cst_8 = arith.constant dense<0.000000e+00> : vector<16x128xf32>
    %9 = tpu.matmul %7, %8, %cst_8 {dimension_numbers = #tpu.dot_dimension_numbers<[1], [0], [0], [1], [0, 0, 1, 1], [], []>} : vector<16x128xf32>, vector<128x128xf32>, vector<16x128xf32> -> vector<16x128xf32>
    %c0_9 = arith.constant 0 : index
    %c0_10 = arith.constant 0 : index
    %10 = vector.load %arg5[%c0_9, %c0_10] : memref<1x128xf32, #tpu.memory_space<vmem>>, vector<1x128xf32>
    %11 = vector.broadcast %10 : vector<1x128xf32> to vector<16x128xf32>
    %12 = arith.addf %9, %11 : vector<16x128xf32>
    %cst_11 = arith.constant 0.000000e+00 : f32
    %13 = vector.broadcast %cst_11 : f32 to vector<16x128xf32>
    %14 = arith.maximumf %12, %13 : vector<16x128xf32>
    %c0_12 = arith.constant 0 : index
    %c0_13 = arith.constant 0 : index
    %15 = vector.load %arg3[%c0_12, %c0_13] : memref<128x32xf32, #tpu.memory_space<vmem>>, vector<128x32xf32>
    %cst_14 = arith.constant dense<0.000000e+00> : vector<16x32xf32>
    %16 = tpu.matmul %14, %15, %cst_14 {dimension_numbers = #tpu.dot_dimension_numbers<[1], [0], [0], [1], [0, 0, 1, 1], [], []>} : vector<16x128xf32>, vector<128x32xf32>, vector<16x32xf32> -> vector<16x32xf32>
    %c0_15 = arith.constant 0 : index
    %c0_16 = arith.constant 0 : index
    %17 = vector.load %arg6[%c0_15, %c0_16] : memref<1x32xf32, #tpu.memory_space<vmem>>, vector<1x32xf32>
    %18 = vector.broadcast %17 : vector<1x32xf32> to vector<16x32xf32>
    %19 = arith.addf %16, %18 : vector<16x32xf32>
    %c0_17 = arith.constant 0 : index
    %c0_18 = arith.constant 0 : index
    %20 = vector.load %arg7[%c0_17, %c0_18] : memref<16x32xf32, #tpu.memory_space<vmem>>, vector<16x32xf32>
    tpu.vector_store %arg7[%c0_17, %c0_18], %19 {strides = array<i32>} : memref<16x32xf32, #tpu.memory_space<vmem>>, vector<16x32xf32>,
    return
  }
}

</mosaic_0001>

<bundles_post_ra>
// kernel: tpu_custom_call.1
= control target key start
LH: loop header
LB: loop body
LE: loop exit
PB: predicated region body
PF: predicated region fallthrough
CT: control target
= control target key end

     0   :  { %12 = vsyncpa [#allocation3], 0  ;;  %s802_s0 = inlined_call_operand.hbm [shape: f32[16,32], index: 0, kind: input, shape index: {}]   ;;  %s803_s1 = inlined_call_operand.vmem [shape: f32[32,128], index: 1, kind: input, shape index: {}]   ;;  %s804_s2 = inlined_call_operand.vmem [shape: f32[128,128], index: 2, kind: input, shape index: {}]   ;;  %s805_s3 = inlined_call_operand.vmem [shape: f32[128,32], index: 3, kind: input, shape index: {}]   ;;  %s806_s4 = inlined_call_operand.vmem [shape: f32[1,128], index: 4, kind: input, shape index: {}]   ;;  %s807_s5 = inlined_call_operand.vmem [shape: f32[1,128], index: 5, kind: input, shape index: {}]   ;;  %s808_s6 = inlined_call_operand.vmem [shape: f32[1,32], index: 6, kind: input, shape index: {}]   ;;  %s809_s7 = inlined_call_operand.hbm [shape: f32[16,32], index: 7, kind: output, shape index: {}]  }
   0x1   :  { %13 = vsyncpa [#allocation4], 0  ;;  %s607_s24 = smov [#allocation2]   ;;  %s559_s28 = scalar_lea.hbm %s802_s0, 256 }
   0x2   :  { %s19_s25 = sshll.u32 %s607_s24, 4  ;;  %p560_p0 = scmp.ne.s32.totalorder %s802_s0, %s559_s28  ;;  %s20_s25 = int_to_ptr.vmem [resolvable:$true] %s19_s25 }
   0x3   :  { %p563_p1 = scmp.lt.u32.totalorder %s559_s28, %s802_s0 }
   0x5   :  { %p565_p2 = pnand %p563_p1, %p560_p0 }
   0x7   :  { %568 = shalt.err (!%p565_p2)
}
   0x8   :  { %s569_s10 = scalar_lea.vmem %s20_s25, 256  ;;  %p574_p4 = scmp.lt.s32.totalorder %s20_s25, %s20_s25 }
   0x9   :  { %p570_p3 = scmp.ne.s32.totalorder %s20_s25, %s569_s10  ;;  %p575_p5 = scmp.lt.s32.totalorder %s569_s10, %s569_s10 }
   0xb   :  { %p576_p6 = por %p575_p5, %p574_p4 }
   0xd   :  { %p577_p7 = pnand %p576_p6, %p570_p3 }
   0xf   :  { %580 = shalt.err (!%p577_p7)
}
  0x10   :  { %s608_s11 = smov 128   ;;  %s609_s12 = smov 8  }
  0x11   :  { %25 = dma.hbm_to_vmem [thread:$0]  %s802_s0, 256, %s20_s25, [#allocation3], %s608_s11, %s608_s11, %s609_s12  }
  0x12   :  { %603 = dma.done.wait [#allocation3], 256  }
  0x13   :  { %604 = vsyncadd [#allocation3], 4294967040  ;;  %vm54_vm0 = vcmask 261120   ;;  %v43_v0 = vld [vmem:[%s803_s1] sm:$0xff]  ;;  %v44_v1 = vld [vmem:[%s803_s1 + $0x8] sm:$0xff] }
  0x14   :  { %v45_v2 = vld [vmem:[%s803_s1 + $0x10] sm:$0xff]  ;;  %v483_v3 = vpack.c.bf16 %v44_v1, %v43_v0  ;;  %v46_v4 = vld [vmem:[%s803_s1 + $0x18] sm:$0xff]  ;;  %v41_v5 = vld [vmem:[#allocation2] sm:$0xff] }
  0x15   :  { %v487_v6 = vpack.c.bf16 %v46_v4, %v45_v2  ;;  %410 = vmatprep.mubr.msk.f32.mxu0 %vm54_vm0, %v41_v5  ;;  %v138_v7 = vld [vmem:[%s804_s2] sm:$0xff]  ;;  %v139_v8 = vld [vmem:[%s804_s2 + $0x8] sm:$0xff]  ;;  %v140_v9 = vld [vmem:[%s804_s2 + $0x10] sm:$0xff] }
  0x16   :  { %484 = vmatprep.subr.bf16.mxu0 %v483_v3  ;;  %v491_v10 = vpack.c.bf16 %v139_v8, %v138_v7  ;;  %v141_v11 = vld [vmem:[%s804_s2 + $0x18] sm:$0xff]  ;;  %v142_v13 = vld [vmem:[%s804_s2 + $0x20] sm:$0xff]  ;;  %v143_v14 = vld [vmem:[%s804_s2 + $0x28] sm:$0xff] }
  0x17   :  { %486 = vmatpush3.bf16.msra.mxu0 %v483_v3  ;;  %v495_v12 = vpack.c.bf16 %v141_v11, %v140_v9  ;;  %v499_v15 = vpack.c.bf16 %v143_v14, %v142_v13  ;;  %v42_v16 = vld [vmem:[#allocation2 + $0x8] sm:$0xff]  ;;  %v144_v17 = vld [vmem:[%s804_s2 + $0x30] sm:$0xff]  ;;  %v145_v18 = vld [vmem:[%s804_s2 + $0x38] sm:$0xff] }
  0x18   :  { %488 = vmatprep.subr.bf16.mxu0 %v487_v6  ;;  %492 = vmatprep.subr.bf16.mxu1 %v491_v10  ;;  %v503_v19 = vpack.c.bf16 %v145_v18, %v144_v17  ;;  %v146_v20 = vld [vmem:[%s804_s2 + $0x40] sm:$0xff]  ;;  %v147_v21 = vld [vmem:[%s804_s2 + $0x48] sm:$0xff]  ;;  %v148_v23 = vld [vmem:[%s804_s2 + $0x50] sm:$0xff] }
  0x19   :  { %494 = vmatpush3.bf16.msra.mxu1 %v491_v10  ;;  %v507_v22 = vpack.c.bf16 %v147_v21, %v146_v20  ;;  %v149_v24 = vld [vmem:[%s804_s2 + $0x58] sm:$0xff]  ;;  %v150_v26 = vld [vmem:[%s804_s2 + $0x60] sm:$0xff]  ;;  %v151_v27 = vld [vmem:[%s804_s2 + $0x68] sm:$0xff] }
  0x1a   :  { %496 = vmatprep.subr.bf16.mxu1 %v495_v12  ;;  %v511_v25 = vpack.c.bf16 %v149_v24, %v148_v23  ;;  %v515_v28 = vpack.c.bf16 %v151_v27, %v150_v26  ;;  %v152_v29 = vld [vmem:[%s804_s2 + $0x70] sm:$0xff]  ;;  %v153_v30 = vld [vmem:[%s804_s2 + $0x78] sm:$0xff]  ;;  %v238_v32 = vld [vmem:[%s805_s3] sm:$0xff] }
  0x1b   :  { %490 = vmatpush3.bf16.msra.mxu0 %v487_v6  ;;  %v519_v31 = vpack.c.bf16 %v153_v30, %v152_v29  ;;  %v239_v33 = vld [vmem:[%s805_s3 + $0x8] sm:$0xff]  ;;  %v240_v34 = vld [vmem:[%s805_s3 + $0x10] sm:$0xff]  ;;  %v241_v36 = vld [vmem:[%s805_s3 + $0x18] sm:$0xff] }
  0x1c   :  { %v523_v35 = vpack.c.bf16 %v239_v33, %v238_v32  ;;  %v527_v37 = vpack.c.bf16 %v241_v36, %v240_v34  ;;  %v242_v38 = vld [vmem:[%s805_s3 + $0x20] sm:$0xff]  ;;  %v243_v39 = vld [vmem:[%s805_s3 + $0x28] sm:$0xff]  ;;  %v244_v41 = vld [vmem:[%s805_s3 + $0x30] sm:$0xff] }
  0x1d   :  { %498 = vmatpush3.bf16.msra.mxu1 %v495_v12  ;;  %v531_v40 = vpack.c.bf16 %v243_v39, %v242_v38  ;;  %v245_v42 = vld [vmem:[%s805_s3 + $0x38] sm:$0xff]  ;;  %v246_v44 = vld [vmem:[%s805_s3 + $0x40] sm:$0xff]  ;;  %v247_v45 = vld [vmem:[%s805_s3 + $0x48] sm:$0xff] }
  0x1e   :  { %411 = vmatmul.mubr.msk.f32.vlgmr.msra.gmra.mrb[0].mxu0 %vm54_vm0, %v42_v16  ;;  %500 = vmatprep.subr.bf16.mxu1 %v499_v15  ;;  %v535_v43 = vpack.c.bf16 %v245_v42, %v244_v41  ;;  %v539_v46 = vpack.c.bf16 %v247_v45, %v246_v44  ;;  %v248_v47 = vld [vmem:[%s805_s3 + $0x50] sm:$0xff]  ;;  %v249_v48 = vld [vmem:[%s805_s3 + $0x58] sm:$0xff]  ;;  %v250_v50 = vld [vmem:[%s805_s3 + $0x60] sm:$0xff] }
  0x1f   :  { %524 = vmatprep.subr.bf16.mxu0 %v523_v35  ;;  %v543_v49 = vpack.c.bf16 %v249_v48, %v248_v47  ;;  %v251_v51 = vld [vmem:[%s805_s3 + $0x68] sm:$0xff]  ;;  %v355_v53 = vld [vmem:[%s806_s4] ss:$0 sm:$0xff]  ;;  %v252_v60 = vld [vmem:[%s805_s3 + $0x70] sm:$0xff] }
  0x20   :  { %526 = vmatpush3.bf16.msra.mxu0 %v523_v35  ;;  %v547_v52 = vpack.c.bf16 %v251_v51, %v250_v50  ;;  %v253_v61 = vld [vmem:[%s805_s3 + $0x78] sm:$0xff]  ;;  %v358_v63 = vld [vmem:[%s807_s5] ss:$0 sm:$0xff]  ;;  %s610_s3 = smov [#allocation5]  }
  0x21   :  { %502 = vmatpush3.bf16.msra.mxu1 %v499_v15  ;;  %528 = vmatprep.subr.bf16.mxu0 %v527_v37  ;;  %v551_v62 = vpack.c.bf16 %v253_v61, %v252_v60  ;;  %v359_v6 = vld [vmem:[%s808_s6] ss:$0 sm:$0xff]  ;;  %s343_s21 = sshll.u32 %s610_s3, 4  ;;  %s344_s21 = int_to_ptr.vmem [resolvable:$true] %s343_s21 }
  0x22   :  { %504 = vmatprep.subr.bf16.mxu1 %v503_v19  ;;  %s581_s5 = scalar_lea.vmem %s344_s21, 256  ;;  %p586_p9 = scmp.lt.s32.totalorder %s344_s21, %s344_s21 }
  0x23   :  { %p582_p8 = scmp.ne.s32.totalorder %s344_s21, %s581_s5  ;;  %p587_p10 = scmp.lt.s32.totalorder %s581_s5, %s581_s5 }
  0x24   :  { %530 = vmatpush3.bf16.msra.mxu0 %v527_v37 }
  0x25   :  { %506 = vmatpush3.bf16.msra.mxu1 %v503_v19  ;;  %532 = vmatprep.subr.bf16.mxu0 %v531_v40  ;;  %p588_p11 = por %p587_p10, %p586_p9 }
  0x26   :  { %508 = vmatprep.subr.bf16.mxu1 %v507_v22 }
  0x27   :  { %p589_p12 = pnand %p588_p11, %p582_p8 }
  0x28   :  { %534 = vmatpush3.bf16.msra.mxu0 %v531_v40 }
  0x29   :  { %510 = vmatpush3.bf16.msra.mxu1 %v507_v22  ;;  %536 = vmatprep.subr.bf16.mxu0 %v535_v43 }
  0x2a   :  { %512 = vmatprep.subr.bf16.mxu1 %v511_v25 }
  0x2c   :  { %538 = vmatpush3.bf16.msra.mxu0 %v535_v43 }
  0x2d   :  { %514 = vmatpush3.bf16.msra.mxu1 %v511_v25  ;;  %540 = vmatprep.subr.bf16.mxu0 %v539_v46 }
  0x2e   :  { %516 = vmatprep.subr.bf16.mxu1 %v515_v28 }
  0x30   :  { %542 = vmatpush3.bf16.msra.mxu0 %v539_v46 }
  0x31   :  { %518 = vmatpush3.bf16.msra.mxu1 %v515_v28  ;;  %544 = vmatprep.subr.bf16.mxu0 %v543_v49 }
  0x32   :  { %520 = vmatprep.subr.bf16.mxu1 %v519_v31 }
  0x34   :  { %546 = vmatpush3.bf16.msra.mxu0 %v543_v49 }
  0x35   :  { %522 = vmatpush3.bf16.msra.mxu1 %v519_v31  ;;  %548 = vmatprep.subr.bf16.mxu0 %v547_v52 }
  0x38   :  { %550 = vmatpush3.bf16.msra.mxu0 %v547_v52 }
  0x39   :  { %552 = vmatprep.subr.bf16.mxu0 %v551_v62 }
  0x3c   :  { %554 = vmatpush3.bf16.msra.mxu0 %v551_v62 }
  0xf1   :  { %v412_v54 = vpop.f32.mrb[0].mxu0 }
  0xf2   :  { %v133_v55 = vadd.f32 %v412_v54, %v355_v53  ;;  %v127_v56 = vpop.f32.mrb[1].mxu0 }
  0xf3   :  { %v128_v57 = vadd.f32 %v355_v53, %v127_v56 }
  0xf4   :  { %v137_v59 = vmax.f32 %v133_v55, 0.0 }
  0xf5   :  { %v136_v58 = vmax.f32 %v128_v57, 0.0 }
  0xf7   :  { %445 = vmatprep.mubr.f32.mxu1 %v136_v58 }
  0xf8   :  { %446 = vmatmul.mubr.f32.vlgmr.msra.gmra.mrb[0].mxu1 %v137_v59 }
 0x1cb   :  { %v447_v0 = vpop.f32.mrb[0].mxu1 }
 0x1cc   :  { %v233_v1 = vadd.f32 %v447_v0, %v358_v63  ;;  %v227_v2 = vpop.f32.mrb[1].mxu1 }
 0x1cd   :  { %v228_v3 = vadd.f32 %v358_v63, %v227_v2 }
 0x1ce   :  { %v237_v5 = vmax.f32 %v233_v1, 0.0 }
 0x1cf   :  { %v236_v4 = vmax.f32 %v228_v3, 0.0 }
 0x1d1   :  { %480 = vmatprep.mubr.f32.mxu0 %v236_v4 }
 0x1d2   :  { %481 = vmatmul.mubr.f32.vlgmr.msra.gmra.mrb[2].mxu0 %v237_v5 }
 0x2a5   :  { %v482_v7 = vpop.f32.mrb[2].mxu0 }
 0x2a6   :  { %v333_v8 = vadd.f32 %v482_v7, %v359_v6  ;;  %v327_v9 = vpop.f32.mrb[3].mxu0 }
 0x2a7   :  { %v328_v10 = vadd.f32 %v359_v6, %v327_v9 }
 0x2a8   :  { %337 = vst.msk [vmem:[#allocation5 + $0x8] sm:$0xff] %vm54_vm0, %v333_v8 }
 0x2a9   :  { %336 = vst.msk [vmem:[#allocation5] sm:$0xff] %vm54_vm0, %v328_v10 }
 0x2aa   :  { %592 = shalt.err (!%p589_p12)
}
 0x2ab   :  { %s593_s0 = scalar_lea.hbm %s809_s7, 256 }
 0x2ac   :  { %p594_p13 = scmp.ne.s32.totalorder %s809_s7, %s593_s0  ;;  %p597_p0 = scmp.lt.u32.totalorder %s593_s0, %s809_s7 }
 0x2ae   :  { %p599_p1 = pnand %p597_p0, %p594_p13 }
 0x2b0   :  { %602 = shalt.err (!%p599_p1)
}
 0x2b1   :  { %349 = dma.vmem_to_hbm [thread:$0]  %s344_s21, 256, %s809_s7, [#allocation4], %s608_s11, %s608_s11, %s609_s12  }
 0x2b2   :  { %605 = dma.done.wait [#allocation4], 256  }
 0x2b3   :  { %606 = vsyncadd [#allocation4], 4294967040 }
 0x2b4   :  { %353 = vsyncpa [#allocation3], 1 }
 0x2b5   :  { %354 = vsyncpa [#allocation4], 1 }

</bundles_post_ra>
